<compile_context>
chip_gen: v7x
topology: tpu7x:2x2x1
jax: 0.10.0
libtpu: 0.0.40
codegen_flags: <defaults>
</compile_context>

<pallas_src>
import functools

import numpy as np
import jax
import jax.numpy as jnp
from jax import lax
from jax.experimental import pallas as pl
from jax.experimental.pallas import tpu as pltpu


def _round_up(x, m):
    return (x + m - 1) // m * m


# --------------------------------------------------------------------------
# Pass 1: BatchNorm batch statistics (single fused sum / sum-of-squares sweep)
# --------------------------------------------------------------------------
def _bn_stats_kernel(x_ref, sum_ref, sq_ref):
    @pl.when(pl.program_id(0) == 0)
    def _():
        sum_ref[...] = jnp.zeros_like(sum_ref)
        sq_ref[...] = jnp.zeros_like(sq_ref)

    bB, N, C = x_ref.shape
    xf = x_ref[...].astype(jnp.float32).reshape(bB * N, C)
    sum_ref[...] += jnp.sum(xf, axis=0, keepdims=True)
    sq_ref[...] += jnp.sum(xf * xf, axis=0, keepdims=True)


# --------------------------------------------------------------------------
# Pass 2: attention pooling + classifier head, batch-blocked
# --------------------------------------------------------------------------
def _attn_pool_kernel(x_ref, mean_ref, inv_ref, ws_ref, wv_ref, hmix_ref,
                      wl_ref, bl_ref, out_ref, xcls_ref, *,
                      compute_dtype, approx_recip):
    bB, N, C = x_ref.shape
    J = ws_ref.shape[1]          # padded Q * num_heads

    x_c = x_ref[...].astype(compute_dtype)                 # (bB, N, C)
    x2 = x_c.reshape(bB * N, C)

    # scores with BN + k-projection + q·k folded into ws (BN bias cancels in
    # the softmax): (bB*N, J) -> (bB, N, J)
    s = jnp.dot(x2, ws_ref[...], preferred_element_type=jnp.float32)
    s = s.reshape(bB, N, J)

    # numerically-stable softmax numerator over tokens, per (batch, query*head)
    m = jnp.max(s, axis=1, keepdims=True)                  # (bB, 1, J)
    e = jnp.exp(s - m)                                     # (bB, N, J)
    denom = jnp.sum(e, axis=1)                             # (bB, J)
    rden = pl.reciprocal(denom, approx=approx_recip)[:, :, None]   # (bB, J, 1)

    # attention-weighted token sums on raw x (MXU); only J vectors per image
    e_t = jnp.swapaxes(e, 1, 2).astype(compute_dtype)      # (bB, J, N)
    z_e = jnp.einsum('bjn,bnc->bjc', e_t, x_c,
                     preferred_element_type=jnp.float32)   # (bB, J, C)

    # normalize the softmax and apply BatchNorm on the tiny pooled result
    z = (z_e * rden - mean_ref[...][None]) * inv_ref[...][None]    # (bB, J, C)

    # v-projection of the J pooled vectors only (instead of all bB*N tokens)
    y = jnp.dot(z.reshape(bB * J, C).astype(compute_dtype), wv_ref[...],
                preferred_element_type=jnp.float32).reshape(bB, J, C)

    # per-head channel selection + mean over queries (hmix is 0/1/Q mask)
    x_cls = jnp.sum(y * hmix_ref[...][None], axis=1)       # (bB, C), f32

    # dense, lane-aligned stores
    xcls_ref[...] = x_cls
    out_ref[...] = (jnp.dot(x_cls.astype(compute_dtype), wl_ref[...],
                            preferred_element_type=jnp.float32) + bl_ref[...])


# --------------------------------------------------------------------------
# Wrapper
# --------------------------------------------------------------------------
def attention_pooling_classifier(x, cls_token, wk, wv, wl, bl, num_heads,
                                 eps=1e-6, block_b=None,
                                 compute_dtype=jnp.bfloat16,
                                 approx_recip=True,
                                 vmem_limit_bytes=48 * 1024 * 1024):
    """x: (B,N,C); cls_token: (1,Q,C); wk,wv: (C,C); wl: (out,C); bl: (out,)."""
    B, N, C = x.shape
    out_dim = wl.shape[0]
    Q = cls_token.shape[1]
    assert C % num_heads == 0
    head_dim = C // num_heads
    scale = float(head_dim) ** -0.5

    # Batch block size: multiple of 8 (sublane-aligned output tiles), sized so
    # the streamed x block stays ~4 MiB (fits comfortably with double
    # buffering and the CxC weight even on v7x's 64 MiB VMEM at ViT shapes).
    if block_b is None:
        bytes_per_row = N * C * jnp.dtype(x.dtype).itemsize
        block_b = max(1, (4 * 1024 * 1024) // max(1, bytes_per_row))
    block_b = max(8, _round_up(block_b, 8))
    block_b = min(block_b, _round_up(B, 8))
    B_pad = _round_up(B, block_b)
    grid_b = B_pad // block_b

    x_p = x
    if B_pad != B:
        x_p = jnp.pad(x, ((0, B_pad - B), (0, 0), (0, 0)))   # zero rows: inert

    # ---- pass 1: BN batch statistics ----
    s, sq = pl.pallas_call(
        _bn_stats_kernel,
        out_shape=(jax.ShapeDtypeStruct((1, C), jnp.float32),
                   jax.ShapeDtypeStruct((1, C), jnp.float32)),
        grid_spec=pltpu.PrefetchScalarGridSpec(
            num_scalar_prefetch=0,
            grid=(grid_b,),
            in_specs=[pl.BlockSpec((block_b, N, C), lambda i: (i, 0, 0))],
            out_specs=(pl.BlockSpec((1, C), lambda i: (0, 0)),
                       pl.BlockSpec((1, C), lambda i: (0, 0)))),
        compiler_params=pltpu.CompilerParams(
            dimension_semantics=("arbitrary",),
            vmem_limit_bytes=vmem_limit_bytes),
    )(x_p)

    m_count = float(B * N)                       # padded rows are zero, excluded
    mean = s / m_count                           # (1, C)
    # NOTE: E[x^2]-E[x]^2 in f32; clamped. For very large-magnitude activations
    # a two-pass variance would be numerically safer.
    var = jnp.maximum(sq / m_count - mean * mean, 0.0)
    inv_std = lax.rsqrt(var + eps)               # (1, C)

    # ---- constant / folded operands (tiny XLA glue between the passes) ----
    QH = Q * num_heads
    J = _round_up(QH, 8)                                            # sublane-clean
    out_pad = _round_up(out_dim, 128)                               # lane-dense out

    cls_scaled = cls_token.reshape(Q, C).astype(jnp.float32) * scale
    seg = ((jnp.arange(C)[:, None] // head_dim)
           == jnp.arange(num_heads)[None, :]).astype(jnp.float32)   # (C, H)

    # Ws[i, (q,h)] = sum_c Wk[c, i] * cls_scaled[q, c] * seg[c, h]; BN folded
    # via the inv_std row scaling (the mean bias cancels inside the softmax).
    ws = jnp.einsum('ci,qc,ch->iqh', wk.astype(jnp.float32), cls_scaled,
                    seg).reshape(C, QH)
    ws_eff = ws * inv_std.T                                         # (C, QH)
    ws_p = jnp.zeros((C, J), compute_dtype).at[:, :QH].set(
        ws_eff.astype(compute_dtype))

    # head-selection / query-mean mask: hmix[q*H+h, c] = seg[c, h] / Q
    hmix = jnp.tile(seg.T, (Q, 1)) / float(Q)                       # (QH, C)
    hmix_p = jnp.zeros((J, C), jnp.float32).at[:QH, :].set(hmix)

    wv_t = wv.T.astype(compute_dtype)                               # (C, C)
    wl_t = jnp.zeros((C, out_pad), compute_dtype).at[:, :out_dim].set(
        wl.T.astype(compute_dtype))
    bl_p = jnp.zeros((1, out_pad), jnp.float32).at[:, :out_dim].set(
        bl.astype(jnp.float32))

    kernel = functools.partial(_attn_pool_kernel,
                               compute_dtype=compute_dtype,
                               approx_recip=approx_recip)

    out_p, xcls_p = pl.pallas_call(
        kernel,
        out_shape=(jax.ShapeDtypeStruct((B_pad, out_pad), jnp.float32),
                   jax.ShapeDtypeStruct((B_pad, C), jnp.float32)),
        grid_spec=pltpu.PrefetchScalarGridSpec(
            num_scalar_prefetch=0,
            grid=(grid_b,),
            in_specs=[
                pl.BlockSpec((block_b, N, C), lambda i: (i, 0, 0)),   # x block
                pl.BlockSpec((1, C), lambda i: (0, 0)),               # mean
                pl.BlockSpec((1, C), lambda i: (0, 0)),               # inv_std
                pl.BlockSpec((C, J), lambda i: (0, 0)),               # folded score W
                pl.BlockSpec((C, C), lambda i: (0, 0)),               # Wv^T
                pl.BlockSpec((J, C), lambda i: (0, 0)),               # head mix mask
                pl.BlockSpec((C, out_pad), lambda i: (0, 0)),         # Wl^T (padded)
                pl.BlockSpec((1, out_pad), lambda i: (0, 0)),         # bias (padded)
            ],
            out_specs=(
                pl.BlockSpec((block_b, out_pad), lambda i: (i, 0)),
                pl.BlockSpec((block_b, C), lambda i: (i, 0)),
            )),
        compiler_params=pltpu.CompilerParams(
            dimension_semantics=("parallel",),       # megacore split over batch
            vmem_limit_bytes=vmem_limit_bytes),
    )(x_p, mean, inv_std, ws_p, wv_t, hmix_p, wl_t, bl_p)

    return out_p[:B, :out_dim], xcls_p[:B, :]


# --------------------------------------------------------------------------
# Pure-JAX reference (mirror of the PyTorch forward, training-mode BN)
# --------------------------------------------------------------------------
def _reference(x, cls_token, wk, wv, wl, bl, num_heads, eps=1e-6):
    B, N, C = x.shape
    dh = C // num_heads
    scale = float(dh) ** -0.5
    xf = x.reshape(B * N, C)
    mean = xf.mean(0)
    var = ((xf - mean) ** 2).mean(0)
    xn = (x - mean) / jnp.sqrt(var + eps)
    q = (jnp.broadcast_to(cls_token, (B,) + cls_token.shape[1:])
         .reshape(B, -1, num_heads, dh).transpose(0, 2, 1, 3)) * scale
    k = (xn @ wk.T).reshape(B, N, num_heads, dh).transpose(0, 2, 1, 3)
    v = (xn @ wv.T).reshape(B, N, num_heads, dh).transpose(0, 2, 1, 3)
    attn = jax.nn.softmax(q @ jnp.swapaxes(k, -2, -1), axis=-1)
    x_cls = (attn @ v).transpose(0, 2, 1, 3).reshape(B, -1, C).mean(axis=1)
    return x_cls @ wl.T + bl, x_cls


if __name__ == "__main__":
    # Small shapes consistent with the module (C divisible by num_heads).
    B, N, C = 16, 16, 128
    num_heads = 8
    num_queries = 1
    out_dim = 10

    key = jax.random.PRNGKey(0)
    kx, kc, kk, kv, kl, kb = jax.random.split(key, 6)

    x = jax.random.normal(kx, (B, N, C), jnp.float32)
    cls_token = jax.random.normal(kc, (1, num_queries, C), jnp.float32) * 0.02
    wk = jax.random.normal(kk, (C, C), jnp.float32) * 0.05   # nn.Linear weight (out,in)
    wv = jax.random.normal(kv, (C, C), jnp.float32) * 0.05
    wl = jax.random.normal(kl, (out_dim, C), jnp.float32) * 0.05
    bl = jax.random.normal(kb, (out_dim,), jnp.float32) * 0.05

    out_ref, x_cls_ref = _reference(x, cls_token, wk, wv, wl, bl, num_heads)

    # Performance config (bf16 MXU operands, approx softmax reciprocal),
    # block_b=8 -> 2 pipelined grid steps.
    out, x_cls = attention_pooling_classifier(
        x, cls_token, wk, wv, wl, bl, num_heads, block_b=8)
    jax.block_until_ready((out, x_cls))
    assert out.shape == (B, out_dim) and x_cls.shape == (B, C)
    np.testing.assert_allclose(np.asarray(out), np.asarray(out_ref),
                               rtol=2e-2, atol=2e-2)
    np.testing.assert_allclose(np.asarray(x_cls), np.asarray(x_cls_ref),
                               rtol=2e-2, atol=2e-2)

    # Exact config (f32 operands, exact reciprocal) — tight semantic check.
    out32, x_cls32 = attention_pooling_classifier(
        x, cls_token, wk, wv, wl, bl, num_heads, block_b=8,
        compute_dtype=jnp.float32, approx_recip=False)
    jax.block_until_ready((out32, x_cls32))
    np.testing.assert_allclose(np.asarray(out32), np.asarray(out_ref),
                               rtol=1e-4, atol=1e-4)
    np.testing.assert_allclose(np.asarray(x_cls32), np.asarray(x_cls_ref),
                               rtol=1e-4, atol=1e-4)

    print("KERNEL_OK")
</pallas_src>

<mosaic_0001>
module attributes {stable_mosaic.version = 11 : i64} {
  func.func @_bn_stats_kernel(%arg0: i32, %arg1: memref<8x16x128xf32, #tpu.memory_space<vmem>>, %arg2: memref<1x128xf32, #tpu.memory_space<vmem>>, %arg3: memref<1x128xf32, #tpu.memory_space<vmem>>) attributes {dimension_semantics = [#tpu.dimension_semantics<arbitrary>], iteration_bounds = array<i64: 2>, scalar_prefetch = 0 : i64, scratch_operands = 0 : i64, tpu.core_type = #tpu.core_type<tc>, window_params = [{transform_indices = @transform_0, window_bounds = array<i64: 8, 16, 128>}, {pipeline_mode = #tpu.pipeline_mode<synchronous>, transform_indices = @transform_1, window_bounds = array<i64: 1, 128>}, {pipeline_mode = #tpu.pipeline_mode<synchronous>, transform_indices = @transform_2, window_bounds = array<i64: 1, 128>}]} {
    %c0_i32 = arith.constant 0 : i32
    %0 = arith.cmpi eq, %arg0, %c0_i32 : i32
    %1 = arith.extui %0 : i1 to i32
    %c0_i32_0 = arith.constant 0 : i32
    %2 = arith.cmpi ne, %1, %c0_i32_0 : i32
    scf.if %2 {
      %cst_12 = arith.constant 0.000000e+00 : f32
      %16 = vector.broadcast %cst_12 : f32 to vector<1x128xf32>
      %c0_13 = arith.constant 0 : index
      %c0_14 = arith.constant 0 : index
      %17 = vector.load %arg2[%c0_13, %c0_14] : memref<1x128xf32, #tpu.memory_space<vmem>>, vector<1x128xf32>
      tpu.vector_store %arg2[%c0_13, %c0_14], %16 {strides = array<i32>} : memref<1x128xf32, #tpu.memory_space<vmem>>, vector<1x128xf32>,
      %cst_15 = arith.constant 0.000000e+00 : f32
      %18 = vector.broadcast %cst_15 : f32 to vector<1x128xf32>
      %c0_16 = arith.constant 0 : index
      %c0_17 = arith.constant 0 : index
      %19 = vector.load %arg3[%c0_16, %c0_17] : memref<1x128xf32, #tpu.memory_space<vmem>>, vector<1x128xf32>
      tpu.vector_store %arg3[%c0_16, %c0_17], %18 {strides = array<i32>} : memref<1x128xf32, #tpu.memory_space<vmem>>, vector<1x128xf32>,
    } else {
    }
    %c0 = arith.constant 0 : index
    %c0_1 = arith.constant 0 : index
    %c0_2 = arith.constant 0 : index
    %3 = vector.load %arg1[%c0, %c0_1, %c0_2] : memref<8x16x128xf32, #tpu.memory_space<vmem>>, vector<8x16x128xf32>
    %4 = vector.shape_cast %3 : vector<8x16x128xf32> to vector<128x128xf32>
    %c0_3 = arith.constant 0 : index
    %c0_4 = arith.constant 0 : index
    %5 = vector.load %arg2[%c0_3, %c0_4] : memref<1x128xf32, #tpu.memory_space<vmem>>, vector<1x128xf32>
    %cst = arith.constant dense<0.000000e+00> : vector<128xf32>
    %6 = vector.multi_reduction <add>, %4, %cst [0] : vector<128x128xf32> to vector<128xf32>
    %7 = vector.shape_cast %6 : vector<128xf32> to vector<1x128xf32>
    %8 = arith.addf %5, %7 : vector<1x128xf32>
    %c0_5 = arith.constant 0 : index
    %c0_6 = arith.constant 0 : index
    %9 = vector.load %arg2[%c0_5, %c0_6] : memref<1x128xf32, #tpu.memory_space<vmem>>, vector<1x128xf32>
    tpu.vector_store %arg2[%c0_5, %c0_6], %8 {strides = array<i32>} : memref<1x128xf32, #tpu.memory_space<vmem>>, vector<1x128xf32>,
    %c0_7 = arith.constant 0 : index
    %c0_8 = arith.constant 0 : index
    %10 = vector.load %arg3[%c0_7, %c0_8] : memref<1x128xf32, #tpu.memory_space<vmem>>, vector<1x128xf32>
    %11 = arith.mulf %4, %4 : vector<128x128xf32>
    %cst_9 = arith.constant dense<0.000000e+00> : vector<128xf32>
    %12 = vector.multi_reduction <add>, %11, %cst_9 [0] : vector<128x128xf32> to vector<128xf32>
    %13 = vector.shape_cast %12 : vector<128xf32> to vector<1x128xf32>
    %14 = arith.addf %10, %13 : vector<1x128xf32>
    %c0_10 = arith.constant 0 : index
    %c0_11 = arith.constant 0 : index
    %15 = vector.load %arg3[%c0_10, %c0_11] : memref<1x128xf32, #tpu.memory_space<vmem>>, vector<1x128xf32>
    tpu.vector_store %arg3[%c0_10, %c0_11], %14 {strides = array<i32>} : memref<1x128xf32, #tpu.memory_space<vmem>>, vector<1x128xf32>,
    return
  }
  func.func @transform_0(%arg0: i32) -> (i32, i32, i32) {
    %c0_i32 = arith.constant 0 : i32
    %c0_i32_0 = arith.constant 0 : i32
    %c0_i32_1 = arith.constant 0 : i32
    return %arg0, %c0_i32, %c0_i32_0 : i32, i32, i32
  }
  func.func @transform_1(%arg0: i32) -> (i32, i32) {
    %c0_i32 = arith.constant 0 : i32
    %c0_i32_0 = arith.constant 0 : i32
    %c0_i32_1 = arith.constant 0 : i32
    return %c0_i32, %c0_i32_0 : i32, i32
  }
  func.func @transform_2(%arg0: i32) -> (i32, i32) {
    %c0_i32 = arith.constant 0 : i32
    %c0_i32_0 = arith.constant 0 : i32
    %c0_i32_1 = arith.constant 0 : i32
    return %c0_i32, %c0_i32_0 : i32, i32
  }
}

</mosaic_0001>

<bundles_post_ra>
// kernel: tpu_custom_call.1
= control target key start
LH: loop header
LB: loop body
LE: loop exit
PB: predicated region body
PF: predicated region fallthrough
CT: control target
= control target key end

     0   :  { %8 = vsyncpa [#allocation3], 0  ;;  %s712_s0 = inlined_call_operand.hbm [shape: f32[16,16,128], index: 0, kind: input, shape index: {}]   ;;  %s713_s1 = inlined_call_operand.hbm [shape: f32[1,128], index: 1, kind: output, shape index: {0}]   ;;  %s714_s2 = inlined_call_operand.hbm [shape: f32[1,128], index: 2, kind: output, shape index: {1}]  }
   0x1   :  { %10 = vsyncpa [#allocation3 + $0x1], 0 }
   0x2   :  { %11 = vsyncpa [#allocation4], 0 }
   0x3   :  { %12 = vsyncpa [#allocation7], 0  ;;  %s537_s9 = smov 0   ;;  %s539_s10 = smov 0  }
   0x4   :  { %s541_s11 = smov 0   ;;  %s543_s12 = smov 0  }
   0x5 LB: > { %s556_s13 = sadd.s32 4294967295, %s514_s12   ;;  %s559_s14 = sadd.s32 1, %s514_s12   ;;  %s514_s12 = sphi %s543_s12, %s721_s12   ;;  %s510_s11 = sphi %s541_s11, %s720_s11   ;;  %s506_s10 = sphi %s539_s10, %s719_s10   ;;  %s502_s9 = sphi %s537_s9, %s718_s9  }
   0x6   : > { %s22_s15 = ssub.s32 %s514_s12, %s559_s14  ;;  %s25_s16 = sadd.s32 1, %s510_s11 }
   0x7   : > { %p23_p0 = scmp.eq.s32.totalorder %s22_s15, 0  ;;  %p32_p1 = scmp.ne.s32.totalorder %s510_s11, %s506_s10 }
   0x8   : > { %p33_p2 = scmp.eq.s32.totalorder %s514_s12, 0  ;;  %p38_p3 = scmp.ne.s32.totalorder %s506_s10, %s502_s9 }
   0x9   : > { %s569_s17 = scalar_select %p23_p0, %s510_s11, %s25_s16  }
   0xa   : > { %p34_p4 = por %p33_p2, %p32_p1  ;;  %p39_p5 = scmp.eq.s32.totalorder %s556_s13, 0 }
   0xb   : > { %p348_p6 = scmp.lt.s32.totalorder %s514_s12, 2  ;;  %s104_s19 = sand.u32 1, %s510_s11  }
   0xc   : > { %p573_p7 = por %p39_p5, %p38_p3  ;;  %s319_s20 = sshll.u32 %s104_s19, 7 }
   0xd   : > { %s333_s21 = sshll.u32 %s514_s12, 11  ;;  %s108_s25 = scalar_lea.vmem [#allocation2], %s319_s20 }
   0xe   : > { %s582_s24 = scalar_lea.hbm %s712_s0, %s333_s21  ;;  %s116_s26 = sshll.u32 %s108_s25, 4  ;;  %s584_s26 = int_to_ptr.vmem [resolvable:$true] %s116_s26 }
   0xf   : > { %p586_p8 = pnand %p348_p6, %p34_p4  ;;  %s591_s28 = scalar_lea.sflag [#allocation3], %s104_s19 }
  0x10   : > { %s390_s29 = scalar_lea.hbm %s582_s24, 2048  ;;  %s395_s4 = scalar_lea.hbm %s712_s0, 4096 }
  0x11   : > { %p391_p10 = scmp.ne.s32.totalorder %s582_s24, %s390_s29  ;;  %p392_p11 = pneg %p586_p8 }
  0x12   : > { %p396_p0 = scmp.lt.u32.totalorder %s582_s24, %s712_s0  ;;  %p397_p1 = scmp.lt.u32.totalorder %s395_s4, %s390_s29 }
  0x13   : > { %p393_p12 = pnand %p392_p11, %p391_p10  ;;  %p399_p3 = scmp.lt.u32.totalorder %s390_s29, %s582_s24 }
  0x14   : > { %p398_p2 = por %p397_p1, %p396_p0 }
  0x15   : > { %p394_p13 = pneg %p393_p12 }
  0x16   : > { %p400_p4 = por %p399_p3, %p398_p2 }
  0x18   : > { %p401_p5 = pnand %p400_p4, %p394_p13 }
  0x1a   : > { %404 = shalt.err (!%p401_p5)
}
  0x1b   : > { %s405_s7 = scalar_lea.vmem %s584_s26, 2048  ;;  %s516_s8 = smov [#allocation2]  }
  0x1c   : > { %p406_p6 = scmp.ne.s32.totalorder %s584_s26, %s405_s7  ;;  %s410_s9 = sshll.u32 %s516_s8, 4  ;;  %s411_s9 = int_to_ptr.vmem [resolvable:$false] %s410_s9 }
  0x1d   : > { %s412_s15 = scalar_lea.vmem %s411_s9, 4096  ;;  %p413_p9 = scmp.lt.s32.totalorder %s584_s26, %s411_s9 }
  0x1e   : > { %p408_p10 = pnand %p406_p6, %p392_p11  ;;  %p414_p0 = scmp.lt.s32.totalorder %s412_s15, %s405_s7 }
  0x20   : > { %p409_p12 = pneg %p408_p10  ;;  %p415_p1 = por %p414_p0, %p413_p9 }
  0x22   : > { %p416_p2 = pnand %p415_p1, %p409_p12 }
  0x24   : > { %419 = shalt.err (!%p416_p2)
}
  0x25   : > { %s517_s16 = smov 128   ;;  %s518_s19 = smov 8  }
  0x26   : > { %347 = dma.hbm_to_vmem [thread:$0]  (!%p586_p8), %s582_s24, 2048, %s584_s26, %s591_s28, %s517_s16, %s517_s16, %s518_s19  }
  0x27   : > { %p124_p11 = scmp.lt.s32.totalorder %s514_s12, 3  ;;  %p717_p13 = scmp.ge.s32.totalorder %s514_s12, 1 }
  0x29   : > { %p125_p3 = pnand %p717_p13, %p124_p11 }
  0x2a   : > { %s130_s20 = sand.u32 (!%p125_p3), 1, %s506_s10  }
  0x2b   : > { %128 = sbr.rel (%p125_p3) target bundleno = 143 (0x8f), region = 24  ;;  %s324_s21 = sshll.u32 (!%p125_p3), %s130_s20, 7 }
  0x2c   : > { %s131_s22 = scalar_lea.sflag (!%p125_p3), [#allocation3], %s130_s20  ;;  %s623_s23 = scalar_lea.vmem (!%p125_p3), [#allocation2], %s324_s21 }
  0x32   : > { %489 = dma.done.wait (%p573_p7), %s131_s22, 2048  }
  0x33   : > { %491 = vsyncadd (%p573_p7), %s131_s22, 4294965248  ;;  %p325_p9 = scmp.ne.s32.totalorder %s556_s13, 0 }
  0x34   : > { %v519_v0 = vmov (!%p325_p9), 0.0  }
  0x35   : > { %154 = sbr.rel (%p325_p9) target bundleno = 60 (0x3c), region = 32  ;;  %155 = vst [vmem:[#allocation5] sm:$0x1] (!%p325_p9), %v519_v0  ;;  %156 = vst [vmem:[#allocation6] sm:$0x1] (!%p325_p9), %v519_v0 }
  0x3c PF: > { %v157_v1 = vld [vmem:[%s623_s23] sm:$0xff]  ;;  %v158_v2 = vld [vmem:[%s623_s23 + $0x8] sm:$0xff]  ;;  %v159_v3 = vld [vmem:[%s623_s23 + $0x10] sm:$0xff]  ;;  %s520_s12 = smov [#allocation5]   ;;  %p349_p7 = scmp.eq.s32.totalorder %s556_s13, 1 }
  0x3d   : > { %v160_v4 = vld [vmem:[%s623_s23 + $0x18] sm:$0xff]  ;;  %v174_v5 = vadd.f32 %v158_v2, %v157_v1  ;;  %v198_v6 = vmul.f32 %v157_v1, %v157_v1  ;;  %v199_v7 = vmul.f32 %v158_v2, %v158_v2  ;;  %v200_v8 = vmul.f32 %v159_v3, %v159_v3  ;;  %v161_v9 = vld [vmem:[%s623_s23 + $0x20] sm:$0xff]  ;;  %v162_v13 = vld [vmem:[%s623_s23 + $0x28] sm:$0xff]  ;;  %s244_s18 = sshll.u32 %s520_s12, 4  ;;  %s521_s24 = smov [#allocation6]   ;;  %s245_s18 = int_to_ptr.vmem [resolvable:$true] %s244_s18 }
  0x3e   : > { %v201_v11 = vmul.f32 %v160_v4, %v160_v4  ;;  %v202_v15 = vmul.f32 %v161_v9, %v161_v9  ;;  %v163_v17 = vld [vmem:[%s623_s23 + $0x30] sm:$0xff]  ;;  %v203_v19 = vmul.f32 %v162_v13, %v162_v13  ;;  %v164_v21 = vld [vmem:[%s623_s23 + $0x38] sm:$0xff]  ;;  %v165_v25 = vld [vmem:[%s623_s23 + $0x40] sm:$0xff]  ;;  %s255_s25 = sshll.u32 %s521_s24, 4  ;;  %s420_s26 = scalar_lea.vmem %s245_s18, 16  ;;  %s647_s25 = int_to_ptr.vmem [resolvable:$true] %s255_s25 }
  0x3f   : > { %v175_v10 = vadd.f32 %v174_v5, %v159_v3  ;;  %v214_v12 = vadd.f32 %v199_v7, %v198_v6  ;;  %v204_v23 = vmul.f32 %v163_v17, %v163_v17  ;;  %v205_v27 = vmul.f32 %v164_v21, %v164_v21  ;;  %v166_v29 = vld [vmem:[%s623_s23 + $0x48] sm:$0xff]  ;;  %v167_v33 = vld [vmem:[%s623_s23 + $0x50] sm:$0xff]  ;;  %v168_v37 = vld [vmem:[%s623_s23 + $0x58] sm:$0xff]  ;;  %p421_p8 = scmp.ne.s32.totalorder %s245_s18, %s420_s26  ;;  %s426_s27 = scalar_lea.vmem %s245_s18, 32 }
  0x40   : > { %v206_v31 = vmul.f32 %v165_v25, %v165_v25  ;;  %v207_v35 = vmul.f32 %v166_v29, %v166_v29  ;;  %v208_v39 = vmul.f32 %v167_v33, %v167_v33  ;;  %v169_v41 = vld [vmem:[%s623_s23 + $0x60] sm:$0xff]  ;;  %v209_v43 = vmul.f32 %v168_v37, %v168_v37  ;;  %v170_v45 = vld [vmem:[%s623_s23 + $0x68] sm:$0xff]  ;;  %v171_v49 = vld [vmem:[%s623_s23 + $0x70] sm:$0xff]  ;;  %p427_p6 = scmp.lt.s32.totalorder %s245_s18, %s245_s18  ;;  %p428_p10 = scmp.lt.s32.totalorder %s426_s27, %s420_s26 }
  0x41   : > { %v176_v14 = vadd.f32 %v175_v10, %v160_v4  ;;  %v215_v16 = vadd.f32 %v214_v12, %v200_v8  ;;  %v210_v47 = vmul.f32 %v169_v41, %v169_v41  ;;  %v211_v51 = vmul.f32 %v170_v45, %v170_v45  ;;  %v172_v53 = vld [vmem:[%s623_s23 + $0x78] sm:$0xff]  ;;  %v173_v7 = vld [vmem:[#allocation5] sm:$0x1]  ;;  %v197_v12 = vld [vmem:[#allocation6] sm:$0x1]  ;;  %p422_p4 = pnand %p421_p8, %p349_p7 }
  0x42   : > { %v212_v55 = vmul.f32 %v171_v49, %v171_v49  ;;  %v213_v58 = vmul.f32 %v172_v53, %v172_v53  ;;  %p429_p12 = por %p428_p10, %p427_p6 }
  0x43   : > { %v177_v18 = vadd.f32 %v176_v14, %v161_v9  ;;  %v216_v20 = vadd.f32 %v215_v16, %v201_v11  ;;  %p423_p5 = pneg %p422_p4 }
  0x45   : > { %v178_v22 = vadd.f32 %v177_v18, %v162_v13  ;;  %v217_v24 = vadd.f32 %v216_v20, %v202_v15  ;;  %p430_p0 = pnand %p429_p12, %p423_p5 }
  0x47   : > { %v179_v26 = vadd.f32 %v178_v22, %v163_v17  ;;  %v218_v28 = vadd.f32 %v217_v24, %v203_v19 }
  0x49   : > { %v180_v30 = vadd.f32 %v179_v26, %v164_v21  ;;  %v219_v32 = vadd.f32 %v218_v28, %v204_v23 }
  0x4b   : > { %v181_v34 = vadd.f32 %v180_v30, %v165_v25  ;;  %v220_v36 = vadd.f32 %v219_v32, %v205_v27 }
  0x4d   : > { %v182_v38 = vadd.f32 %v181_v34, %v166_v29  ;;  %v221_v40 = vadd.f32 %v220_v36, %v206_v31 }
  0x4f   : > { %v183_v42 = vadd.f32 %v182_v38, %v167_v33  ;;  %v222_v44 = vadd.f32 %v221_v40, %v207_v35 }
  0x51   : > { %v184_v46 = vadd.f32 %v183_v42, %v168_v37  ;;  %v223_v48 = vadd.f32 %v222_v44, %v208_v39 }
  0x53   : > { %v185_v50 = vadd.f32 %v184_v46, %v169_v41  ;;  %v224_v52 = vadd.f32 %v223_v48, %v209_v43 }
  0x55   : > { %v186_v54 = vadd.f32 %v185_v50, %v170_v45  ;;  %v225_v56 = vadd.f32 %v224_v52, %v210_v47 }
  0x57   : > { %v187_v57 = vadd.f32 %v186_v54, %v171_v49  ;;  %v226_v59 = vadd.f32 %v225_v56, %v211_v51 }
  0x59   : > { %v188_v60 = vadd.f32 %v187_v57, %v172_v53  ;;  %v227_v61 = vadd.f32 %v226_v59, %v212_v55 }
  0x5b   : > { %v189_v62 = vrot.slane %v188_v60, 4  ;;  %v228_v63 = vadd.f32 %v227_v61, %v213_v58 }
  0x5d   : > { %v190_v0 = vadd.f32 %v189_v62, %v188_v60  ;;  %v229_v1 = vrot.slane %v228_v63, 4 }
  0x5f   : > { %v191_v2 = vrot.slane %v190_v0, 2  ;;  %v230_v3 = vadd.f32 %v229_v1, %v228_v63 }
  0x61   : > { %v192_v4 = vadd.f32 %v191_v2, %v190_v0  ;;  %v231_v5 = vrot.slane %v230_v3, 2 }
  0x63   : > { %v193_v6 = vrot.slane %v192_v4, 1  ;;  %v232_v8 = vadd.f32 %v231_v5, %v230_v3 }
  0x65   : > { %v194_v9 = vadd.f32 %v193_v6, %v192_v4  ;;  %v233_v10 = vrot.slane %v232_v8, 1 }
  0x67   : > { %v195_v11 = vadd.f32 %v194_v9, %v173_v7  ;;  %v234_v13 = vadd.f32 %v233_v10, %v232_v8 }
  0x69   : > { %196 = vst [vmem:[#allocation5] sm:$0x1] %v195_v11  ;;  %v235_v14 = vadd.f32 %v234_v13, %v197_v12 }
  0x6a   : > { %433 = shalt.err (!%p430_p0)
}
  0x6b   : > { %s434_s30 = scalar_lea.hbm %s713_s1, 16 }
  0x6c   : > { %p435_p1 = scmp.ne.s32.totalorder %s713_s1, %s434_s30  ;;  %p440_p13 = scmp.lt.u32.totalorder %s434_s30, %s713_s1 }
  0x6e   : > { %p436_p2 = pnand %p435_p1, %p349_p7 }
  0x70   : > { %p437_p11 = pneg %p436_p2 }
  0x72   : > { %p442_p3 = pnand %p440_p13, %p437_p11 }
  0x74   : > { %445 = shalt.err (!%p442_p3)
}
  0x75   : > { %337 = dma.vmem_to_hbm [thread:$0]  (%p349_p7), %s245_s18, 16, %s713_s1, [#allocation4]   ;;  %236 = vst [vmem:[#allocation6] sm:$0x1] %v235_v14 }
  0x76   : > { %s446_s9 = scalar_lea.vmem %s647_s25, 16  ;;  %s452_s15 = scalar_lea.vmem %s647_s25, 32 }
  0x77   : > { %p447_p9 = scmp.ne.s32.totalorder %s647_s25, %s446_s9  ;;  %p453_p5 = scmp.lt.s32.totalorder %s647_s25, %s647_s25 }
  0x78   : > { %p454_p6 = scmp.lt.s32.totalorder %s452_s15, %s446_s9 }
  0x79   : > { %p448_p8 = pnand %p447_p9, %p349_p7 }
  0x7a   : > { %p455_p10 = por %p454_p6, %p453_p5 }
  0x7b   : > { %p449_p4 = pneg %p448_p8 }
  0x7d   : > { %p456_p12 = pnand %p455_p10, %p449_p4 }
  0x7f   : > { %459 = shalt.err (!%p456_p12)
}
  0x80   : > { %s460_s20 = scalar_lea.hbm %s714_s2, 16 }
  0x81   : > { %p461_p0 = scmp.ne.s32.totalorder %s714_s2, %s460_s20  ;;  %p466_p11 = scmp.lt.u32.totalorder %s460_s20, %s714_s2 }
  0x83   : > { %p462_p1 = pnand %p461_p0, %p349_p7 }
  0x85   : > { %p463_p2 = pneg %p462_p1 }
  0x87   : > { %p468_p13 = pnand %p466_p11, %p463_p2 }
  0x89   : > { %471 = shalt.err (!%p468_p13)
}
  0x8a   : > { %339 = dma.vmem_to_hbm [thread:$0]  (%p349_p7), %s647_s25, 16, %s714_s2, [#allocation7]  }
  0x8b   : > { %493 = dma.done.wait (%p349_p7), [#allocation4], 16  }
  0x8c   : > { %495 = vsyncadd (%p349_p7), [#allocation4], 4294967280 }
  0x8d   : > { %497 = dma.done.wait (%p349_p7), [#allocation7], 16  }
  0x8e   : > { %499 = vsyncadd (%p349_p7), [#allocation7], 4294967280 }
  0x8f PF: > { %p15_p3 = scmp.ge.s32.totalorder %s559_s14, 4   ;;  %s718_s9 = smov %s506_s10 }
  0x90   : > { %s719_s10 = smov %s510_s11  ;;  %s720_s11 = smov %s569_s17 }
  0x91   : > { %s721_s12 = smov %s559_s14  ;;  %17 = sbr.rel (!%p15_p3) target bundleno = 5 (0x5), region = 73 }
  0x98   :  { %272 = vsyncpa [#allocation3], 1 }
  0x99   :  { %274 = vsyncpa [#allocation3 + $0x1], 1 }
  0x9a   :  { %275 = vsyncpa [#allocation4], 1 }
  0x9b   :  { %277 = vsyncpa [#allocation4 + $0x1], 1 }
  0x9c   :  { %278 = vsyncpa [#allocation7], 1 }

</bundles_post_ra>
